<compile_context>
chip_gen: v7x
topology: tpu7x:2x2x1
jax: 0.10.0
libtpu: 0.0.40
codegen_flags: <defaults>
</compile_context>

<pallas_src>
import jax
import jax.numpy as jnp
from jax.experimental import pallas as pl
from jax.experimental.pallas import tpu as pltpu

_LANES = 128      # vreg lane width
_SUBLANES = 8     # vreg sublane depth (f32)


def affine_kernel(coef_ref, x_ref, o_ref):
    # coef_ref: SMEM f32[3] = [w0, w1, b]   (collapsed affine coefficients)
    # x_ref   : VMEM (2, TR, 128)           feature-major; batch spread over (sublane, lane)
    # o_ref   : VMEM (TR, 128)              fully-dense, unmasked stores
    w0 = coef_ref[0]
    w1 = coef_ref[1]
    b = coef_ref[2]
    x0 = x_ref[0].astype(jnp.float32)       # (TR, 128) dense slab (also supports bf16 inputs)
    x1 = x_ref[1].astype(jnp.float32)
    # Pure VPU broadcast FMA; no MXU involvement.
    o_ref[...] = x0 * w0 + x1 * w1 + b


def circle_model_v1(x, params, *, max_rows_per_step=4096, min_steps=2):
    """x: (N, 2) float32 (or bf16). Returns (N, 1) float32, matching CircleModelV1.forward."""
    (w1, b1), (w2, b2), (w3, b3) = params
    N, d_in = x.shape
    assert d_in == 2

    # No activations between layers => collapse to one affine map (done once, outside the kernel):
    #   ((x @ W1^T + b1) @ W2^T + b2) @ W3^T + b3  ==  x @ W_eff + b_eff
    w_eff = (w1.T @ w2.T @ w3.T).astype(jnp.float32)            # (2, 1)
    b_eff = ((b1 @ w2.T + b2) @ w3.T + b3).astype(jnp.float32)  # (1,)
    coef = jnp.concatenate([w_eff[:, 0], b_eff])                # (3,) -> SMEM

    # --- tiling: batch mapped onto a dense (rows, 128) grid ------------------------------------
    rows_needed = pl.cdiv(N, _LANES)
    # TR: multiple of 8, <= max_rows_per_step, and small enough to keep >= min_steps grid steps
    # when the batch allows it (keeps both v7x TensorCores busy via "parallel" semantics).
    tr = min(max_rows_per_step, max(_SUBLANES, pl.cdiv(rows_needed, min_steps)))
    tr = pl.cdiv(tr, _SUBLANES) * _SUBLANES
    n_rows = pl.cdiv(rows_needed, tr) * tr
    n_pad = n_rows * _LANES

    # Pad + feature-major transpose + (rows, 128) reshape: one fused XLA pass under jit,
    # no materialized intermediates.
    xt = jnp.pad(x, ((0, n_pad - N), (0, 0))).T.reshape(2, n_rows, _LANES)

    grid = (n_rows // tr,)
    out = pl.pallas_call(
        affine_kernel,
        out_shape=jax.ShapeDtypeStruct((n_rows, _LANES), jnp.float32),
        grid_spec=pltpu.PrefetchScalarGridSpec(
            num_scalar_prefetch=0,
            grid=grid,
            in_specs=[
                pl.BlockSpec(memory_space=pltpu.MemorySpace.SMEM),   # coef (3,) scalars
                pl.BlockSpec((2, tr, _LANES), lambda i: (0, i, 0)),  # dense (TR,128) loads x2
            ],
            out_specs=pl.BlockSpec((tr, _LANES), lambda i: (i, 0)),  # dense (TR,128) stores
        ),
        compiler_params=pltpu.CompilerParams(
            dimension_semantics=("parallel",),
        ),
    )(coef, xt)

    # Contiguous reshape (free) + slice; avoids another full-array materialization.
    return out.reshape(n_pad, 1)[:N]


def init_params(key):
    """Deterministic init mirroring nn.Linear shapes: W is (out, in), b is (out,)."""
    def linear_init(k, out_f, in_f):
        kw, kb = jax.random.split(k)
        bound = 1.0 / jnp.sqrt(in_f)
        w = jax.random.uniform(kw, (out_f, in_f), jnp.float32, -bound, bound)
        b = jax.random.uniform(kb, (out_f,), jnp.float32, -bound, bound)
        return w, b

    k1, k2, k3 = jax.random.split(key, 3)
    return (
        linear_init(k1, 10, 2),    # layer1: Linear(2, 10)
        linear_init(k2, 10, 10),   # layer2: Linear(10, 10)
        linear_init(k3, 1, 10),    # layer3: Linear(10, 1)
    )


if __name__ == "__main__":
    key = jax.random.PRNGKey(0)
    k_x, k_p = jax.random.split(key)

    # N=2000 -> 16 padded (rows,128) tiles -> TR=8, a 2-step "parallel" grid (both v7x TCs active)
    # and a ragged tail that exercises the padded path.
    N = 2000
    x = jax.random.normal(k_x, (N, 2), jnp.float32)
    params = init_params(k_p)

    fwd = jax.jit(circle_model_v1)           # lets pad+transpose+reshape fuse into one pass
    out = fwd(x, params)
    jax.block_until_ready(out)

    # Pure-JAX reference (original sequential 3-layer formulation) for correctness.
    (w1, b1), (w2, b2), (w3, b3) = params
    ref = ((x @ w1.T + b1) @ w2.T + b2) @ w3.T + b3
    assert out.shape == (N, 1)
    assert jnp.allclose(out, ref, atol=1e-4, rtol=1e-4), float(jnp.max(jnp.abs(out - ref)))

    print("KERNEL_OK")
</pallas_src>

<mosaic_0001>
module attributes {stable_mosaic.version = 11 : i64} {
  func.func @affine_kernel(%arg0: i32, %arg1: memref<3xf32, #tpu.memory_space<smem>>, %arg2: memref<2x8x128xf32, #tpu.memory_space<vmem>>, %arg3: memref<8x128xf32, #tpu.memory_space<vmem>>) attributes {dimension_semantics = [#tpu.dimension_semantics<parallel>], iteration_bounds = array<i64: 2>, scalar_prefetch = 0 : i64, scratch_operands = 0 : i64, tpu.core_type = #tpu.core_type<tc>, window_params = [{transform_indices = @transform_0, window_bounds = array<i64: 3>}, {transform_indices = @transform_1, window_bounds = array<i64: 2, 8, 128>}, {transform_indices = @transform_2, window_bounds = array<i64: 8, 128>}]} {
    %c0 = arith.constant 0 : index
    %0 = memref.load %arg1[%c0] : memref<3xf32, #tpu.memory_space<smem>>
    %c1 = arith.constant 1 : index
    %1 = memref.load %arg1[%c1] : memref<3xf32, #tpu.memory_space<smem>>
    %c2 = arith.constant 2 : index
    %2 = memref.load %arg1[%c2] : memref<3xf32, #tpu.memory_space<smem>>
    %c0_0 = arith.constant 0 : index
    %c0_1 = arith.constant 0 : index
    %c0_2 = arith.constant 0 : index
    %3 = vector.load %arg2[%c0_0, %c0_1, %c0_2] : memref<2x8x128xf32, #tpu.memory_space<vmem>>, vector<1x8x128xf32>
    %4 = vector.shape_cast %3 : vector<1x8x128xf32> to vector<8x128xf32>
    %c1_3 = arith.constant 1 : index
    %c0_4 = arith.constant 0 : index
    %c0_5 = arith.constant 0 : index
    %5 = vector.load %arg2[%c1_3, %c0_4, %c0_5] : memref<2x8x128xf32, #tpu.memory_space<vmem>>, vector<1x8x128xf32>
    %6 = vector.shape_cast %5 : vector<1x8x128xf32> to vector<8x128xf32>
    %7 = vector.broadcast %0 : f32 to vector<8x128xf32>
    %8 = arith.mulf %4, %7 : vector<8x128xf32>
    %9 = vector.broadcast %1 : f32 to vector<8x128xf32>
    %10 = arith.mulf %6, %9 : vector<8x128xf32>
    %11 = arith.addf %8, %10 : vector<8x128xf32>
    %12 = vector.broadcast %2 : f32 to vector<8x128xf32>
    %13 = arith.addf %11, %12 : vector<8x128xf32>
    %c0_6 = arith.constant 0 : index
    %c0_7 = arith.constant 0 : index
    %14 = vector.load %arg3[%c0_6, %c0_7] : memref<8x128xf32, #tpu.memory_space<vmem>>, vector<8x128xf32>
    tpu.vector_store %arg3[%c0_6, %c0_7], %13 {strides = array<i32>} : memref<8x128xf32, #tpu.memory_space<vmem>>, vector<8x128xf32>,
    return
  }
  func.func @transform_0(%arg0: i32) -> i32 {
    %c0_i32 = arith.constant 0 : i32
    %c0_i32_0 = arith.constant 0 : i32
    return %c0_i32 : i32
  }
  func.func @transform_1(%arg0: i32) -> (i32, i32, i32) {
    %c0_i32 = arith.constant 0 : i32
    %c0_i32_0 = arith.constant 0 : i32
    %c0_i32_1 = arith.constant 0 : i32
    return %c0_i32, %arg0, %c0_i32_0 : i32, i32, i32
  }
  func.func @transform_2(%arg0: i32) -> (i32, i32) {
    %c0_i32 = arith.constant 0 : i32
    %c0_i32_0 = arith.constant 0 : i32
    return %arg0, %c0_i32 : i32, i32
  }
}

</mosaic_0001>

<bundles_post_ra>
// kernel: circle_model_v1.1
= control target key start
LH: loop header
LB: loop body
LE: loop exit
PB: predicated region body
PF: predicated region fallthrough
CT: control target
= control target key end

     0   :  { %7 = vsyncpa [#allocation4], 0  ;;  %s600_s0 = inlined_call_operand.vmem [shape: f32[3], index: 0, kind: input, shape index: {}]   ;;  %s601_s1 = inlined_call_operand.vmem [shape: f32[2,16,128], index: 1, kind: input, shape index: {}]   ;;  %s602_s2 = inlined_call_operand.hbm [shape: f32[16,128], index: 2, kind: output, shape index: {}]  }
   0x1   :  { %8 = vsyncpa [#allocation3], 0 }
   0x2   :  { %10 = vsyncpa [#allocation3 + $0x1], 0  ;;  %s466_s9 = smov 0   ;;  %s468_s10 = smov 0  }
   0x3   :  { %s470_s11 = smov 0   ;;  %s472_s12 = smov 0  }
   0x4 LB: > { %s487_s13 = sadd.s32 4294967295, %s447_s12   ;;  %s299_s14 = sadd.s32 4294967294, %s447_s12   ;;  %s447_s12 = sphi %s472_s12, %s613_s12   ;;  %s443_s11 = sphi %s470_s11, %s612_s11   ;;  %s439_s10 = sphi %s468_s10, %s611_s10   ;;  %s435_s9 = sphi %s466_s9, %s610_s9  }
   0x5   : > { %s491_s15 = sadd.s32 1, %s447_s12   ;;  %s44_s16 = sadd.s32 1, %s443_s11 }
   0x6   : > { %s41_s17 = ssub.s32 %s447_s12, %s491_s15  ;;  %p51_p0 = scmp.ne.s32.totalorder %s443_s11, %s439_s10 }
   0x7   : > { %p42_p1 = scmp.eq.s32.totalorder %s41_s17, 0  ;;  %p52_p2 = scmp.eq.s32.totalorder %s447_s12, 0 }
   0x8   : > { %p81_p3 = scmp.eq.s32.totalorder %s487_s13, 1  ;;  %p86_p4 = scmp.ne.s32.totalorder %s439_s10, %s435_s9 }
   0x9   : > { %s503_s18 = scalar_select %p42_p1, %s443_s11, %s44_s16  }
   0xa   : > { %p505_p5 = por %p52_p2, %p51_p0  ;;  %p509_p6 = por %p81_p3, %p51_p0 }
   0xb   : > { %p87_p7 = scmp.eq.s32.totalorder %s299_s14, 1  ;;  %p300_p8 = scmp.ge.s32.totalorder %s447_s12, 1 }
   0xc   : > { %s605_s20 = scalar_select %p509_p6, 1, 0 }
   0xd   : > { %p94_p9 = scmp.lt.s32.totalorder %s447_s12, 3  ;;  %p515_p10 = por %p87_p7, %p86_p4 }
   0xe   : > { %p330_p11 = scmp.eq.s32.totalorder %s487_s13, 0  ;;  %s107_s25 = sshll.u32 %s600_s0, 4  ;;  %s108_s25 = int_to_ptr.vmem [resolvable:$true] %s107_s25 }
   0xf   : > { %s606_s21 = scalar_select %p515_p10, 1, 0 }
  0x10   : > { %p520_p12 = pnand %p300_p8, %p94_p9  ;;  %s366_s26 = scalar_lea.vmem %s108_s25, 16 }
  0x11   : > { %p367_p1 = scmp.ne.s32.totalorder %s108_s25, %s366_s26  ;;  %p374_p7 = scmp.lt.s32.totalorder %s108_s25, %s108_s25 }
  0x12   : > { %p322_p13 = pneg %p520_p12  ;;  %p375_p8 = scmp.lt.s32.totalorder %s366_s26, %s366_s26 }
  0x14   : > { %p323_p0 = pnand %p330_p11, %p322_p13  ;;  %p376_p9 = por %p375_p8, %p374_p7 }
  0x16   : > { %p368_p2 = pneg %p323_p0 }
  0x18   : > { %p369_p3 = pnand %p368_p2, %p367_p1 }
  0x1a   : > { %p370_p4 = pneg %p369_p3 }
  0x1c   : > { %p377_p10 = pnand %p376_p9, %p370_p4 }
  0x1e   : > { %380 = shalt.err (!%p377_p10)
}
  0x1f   : > { %s449_s27 = smov [#allocation2]   ;;  %p302_p6 = scmp.ge.s32.totalorder %s447_s12, 2 }
  0x20   : > { %325 = dma.vmem_to_smem (!%p323_p0), %s108_s25, 16, %s449_s27, [#allocation4]  }
  0x21   : > { %114 = sbr.rel (%p302_p6) target bundleno = 47 (0x2f), region = 20 }
  0x28   : > { %117 = sbr.rel (!%p505_p5) target bundleno = 47 (0x2f), region = 24  ;;  %s119_s28 = sand.u32 (%p505_p5), 1, %s443_s11  }
  0x29   : > { %s304_s29 = sshll.u32 (%p505_p5), %s447_s12, 3  ;;  %s303_s30 = sshll.u32 (%p505_p5), %s119_s28, 4 }
  0x2a   : > { %s123_s5 = scalar_lea.vmem (%p505_p5), %s601_s1, %s304_s29  ;;  %s121_s6 = scalar_lea.vmem (%p505_p5), [#allocation5], %s303_s30 }
  0x2b   : > { %v153_v0 = vld [vmem:[%s123_s5] sm:$0xff] (%p505_p5)  ;;  %v155_v1 = vld [vmem:[%s123_s5 + $0x10] sm:$0xff] (%p505_p5) }
  0x2c   : > { %154 = vst [vmem:[%s121_s6] sm:$0xff] (%p505_p5), %v153_v0  ;;  %156 = vst [vmem:[%s121_s6 + $0x8] sm:$0xff] (%p505_p5), %v155_v1 }
  0x2f PF: > { %165 = sbr.rel (%p520_p12) target bundleno = 87 (0x57), region = 62 }
  0x36   : > { %426 = dma.done.wait (%p330_p11), [#allocation4], 16  }
  0x37   : > { %428 = vsyncadd (%p330_p11), [#allocation4], 4294967280  ;;  %s548_s7 = sand.u32 1, %s439_s10  }
  0x38   : > { %s307_s8 = sshll.u32 %s548_s7, 4 }
  0x39   : > { %s174_s14 = scalar_lea.vmem [#allocation5], %s307_s8 }
  0x3a   : > { %178 = sfence }
  0x3b   : > { %s194_s16 = sld [smem:[#allocation2]]  ;;  %s309_s17 = sld [smem:[#allocation2 + $0x1]]  ;;  %v197_v2 = vld [vmem:[%s174_s14] sm:$0xff]  ;;  %v311_v3 = vld [vmem:[%s174_s14 + $0x8] sm:$0xff] }
  0x3c   : > { %s308_s19 = sshll.u32 %s548_s7, 3  ;;  %s310_s22 = sld [smem:[#allocation2 + $0x2]] }
  0x3d   : > { %s193_s23 = scalar_lea.vmem [#allocation6], %s308_s19  ;;  %s313_s25 = sshll.u32 %s487_s13, 7 }
  0x3e   : > { %s222_s24 = sshll.u32 %s193_s23, 4  ;;  %s558_s28 = scalar_lea.hbm %s602_s2, %s313_s25  ;;  %s553_s24 = int_to_ptr.vmem [resolvable:$true] %s222_s24 }
  0x3f   : > { %s209_s29 = scalar_lea.sflag [#allocation3], %s548_s7  ;;  %s381_s30 = scalar_lea.vmem %s553_s24, 128 }
  0x40   : > { %p382_p5 = scmp.ne.s32.totalorder %s553_s24, %s381_s30  ;;  %p608_p10 = scmp.ne.s32.totalorder %s605_s20, 0 }
  0x41   : > { %v200_v4 = vstv %s194_s16  ;;  %v202_v6 = vstv %s309_s17  ;;  %s450_s13 = smov [#allocation6]  }
  0x42   : > { %v201_v5 = vmul.f32 %v200_v4, %v197_v2  ;;  %v203_v7 = vmul.f32 %v311_v3, %v202_v6  ;;  %v205_v8 = vstv %s310_s22  ;;  %p383_p11 = pnand %p382_p5, %p608_p10  ;;  %s385_s3 = sshll.u32 %s450_s13, 4  ;;  %s386_s3 = int_to_ptr.vmem [resolvable:$false] %s385_s3 }
  0x43   : > { %s387_s4 = scalar_lea.vmem %s386_s3, 256  ;;  %p388_p13 = scmp.lt.s32.totalorder %s553_s24, %s386_s3 }
  0x44   : > { %v204_v9 = vadd.f32 %v203_v7, %v201_v5  ;;  %p384_p12 = pneg %p383_p11  ;;  %p389_p0 = scmp.lt.s32.totalorder %s387_s4, %s381_s30 }
  0x46   : > { %v206_v10 = vadd.f32 %v205_v8, %v204_v9  ;;  %p390_p1 = por %p389_p0, %p388_p13 }
  0x48   : > { %207 = vst [vmem:[%s193_s23] sm:$0xff] %v206_v10  ;;  %p391_p2 = pnand %p390_p1, %p384_p12 }
  0x4a   : > { %394 = shalt.err (!%p391_p2)
}
  0x4b   : > { %s395_s5 = scalar_lea.hbm %s558_s28, 128  ;;  %s399_s8 = scalar_lea.hbm %s602_s2, 256 }
  0x4c   : > { %p396_p3 = scmp.ne.s32.totalorder %s558_s28, %s395_s5  ;;  %p400_p8 = scmp.lt.u32.totalorder %s558_s28, %s602_s2 }
  0x4d   : > { %p401_p9 = scmp.lt.u32.totalorder %s399_s8, %s395_s5  ;;  %p403_p11 = scmp.lt.u32.totalorder %s395_s5, %s558_s28 }
  0x4e   : > { %p397_p4 = pnand %p396_p3, %p608_p10 }
  0x4f   : > { %p402_p5 = por %p401_p9, %p400_p8 }
  0x50   : > { %p398_p7 = pneg %p397_p4 }
  0x51   : > { %p404_p12 = por %p403_p11, %p402_p5 }
  0x53   : > { %p405_p13 = pnand %p404_p12, %p398_p7 }
  0x55   : > { %408 = shalt.err (!%p405_p13)
}
  0x56   : > { %320 = dma.vmem_to_hbm [thread:$0]  (%p608_p10), %s553_s24, 128, %s558_s28, %s209_s29  }
  0x57 PF: > { %s234_s17 = sand.u32 1, %s435_s9   ;;  %p609_p0 = scmp.ne.s32.totalorder %s606_s21, 0 }
  0x58   : > { %s235_s19 = scalar_lea.sflag [#allocation3], %s234_s17 }
  0x59   : > { %p327_p1 = pnand %p302_p6, %p609_p0 }
  0x5b   : > { %430 = dma.done.wait (!%p327_p1), %s235_s19, 128  }
  0x5c   : > { %432 = vsyncadd (!%p327_p1), %s235_s19, 4294967168  ;;  %p13_p2 = scmp.ge.s32.totalorder %s491_s15, 4   ;;  %s610_s9 = smov %s439_s10 }
  0x5d   : > { %s611_s10 = smov %s443_s11  ;;  %s612_s11 = smov %s503_s18 }
  0x5e   : > { %s613_s12 = smov %s491_s15  ;;  %15 = sbr.rel (!%p13_p2) target bundleno = 4 (0x4), region = 112 }
  0x65   :  { %240 = vsyncpa [#allocation3], 1 }
  0x66   :  { %242 = vsyncpa [#allocation3 + $0x1], 1 }
  0x67   :  { %243 = vsyncpa [#allocation4], 1 }
  0x68   :  { %245 = vsyncpa [#allocation4 + $0x1], 1 }

</bundles_post_ra>
